<compile_context>
chip_gen: v7x
topology: tpu7x:2x2x1
jax: 0.10.0
libtpu: 0.0.40
codegen_flags: <defaults>
</compile_context>

<pallas_src>
import functools

import jax
import jax.numpy as jnp
from jax.experimental import pallas as pl
from jax.experimental.pallas import tpu as pltpu


def _round_up(x, m):
    return ((x + m - 1) // m) * m


def _linear_kernel(x_ref, w_ref, b_ref, o_ref):
    # x_ref: (tm, D)  w_ref: (D, Lp)  b_ref: (1, Lp)  o_ref: (tm, Lp)
    # In-kernel cast of the x tile to the weight dtype (no-op for f32 weights,
    # bf16-MXU path for bf16 weights) rides an otherwise-idle VPU slot.
    x = x_ref[...].astype(w_ref.dtype)
    acc = jnp.dot(x, w_ref[...], preferred_element_type=jnp.float32)
    o_ref[...] = (acc + b_ref[...]).astype(o_ref.dtype)  # bias add in f32


def prepare_params(weight, bias, *, lane=128, compute_dtype=jnp.float32):
    """One-time parameter prep (call once at init, NOT per forward):
       - transpose PyTorch (L, D) weight -> (D, L) so no per-call .T
       - zero-pad only the label dim L to a lane-dense 128 (no D padding:
         the kernel's x block uses the full contraction dim directly)
       - pass compute_dtype=jnp.bfloat16 on v6e/v7x for the bf16 MXU path;
         the x tile is cast in-kernel and accumulation stays f32.
    """
    L, D = weight.shape
    Lp = _round_up(L, lane)
    w_t = (
        jnp.zeros((D, Lp), dtype=compute_dtype)
        .at[:, :L]
        .set(weight.T.astype(compute_dtype))
    )
    # Bias add happens in f32 in the kernel epilogue (v5e-safe).
    b2d = jnp.zeros((1, Lp), dtype=jnp.float32).at[0, :L].set(bias.astype(jnp.float32))
    return w_t, b2d


def _choose_tm(B, D, Lp, tm_max, x_itemsize, out_itemsize):
    """Batch tile: multiple of 8 sublanes, capped by (a) the requested max,
    (b) a VMEM budget safe on v7x (64 MiB physical / 32 MiB scoped), and
    (c) the batch itself.  For big batches keep the grid >= 2 steps so the
    'parallel' axis can be sharded across v7x's two TensorCores."""
    vmem_budget = 24 << 20  # double-buffered x + out tiles; leaves headroom for W/b
    per_row = 2 * D * x_itemsize + 2 * Lp * out_itemsize
    tm_vmem = max(8, (vmem_budget // per_row) // 8 * 8)
    tm_eff = max(8, min(tm_max, tm_vmem, _round_up(B, 8)))
    if B > 16 and pl.cdiv(B, tm_eff) < 2:
        tm_eff = max(8, _round_up(pl.cdiv(B, 2), 8))
    return tm_eff


@functools.partial(jax.jit, static_argnames=("num_labels", "tm", "out_dtype"))
def linear_classifier_forward(x, w_t, b_pad, *, num_labels, tm=2048,
                              out_dtype=jnp.float32):
    """x:     (B, ...) any trailing shape; flattened like torch's x.view(B, -1)
       w_t:   (D, Lp) pre-transposed, label-padded weight (from prepare_params)
       b_pad: (1, Lp) padded bias (f32)
       out_dtype: jnp.float32 (default) or jnp.bfloat16 to halve logits writeback
    """
    B = x.shape[0]
    D_w, Lp = w_t.shape

    # Same flattening as torch's x.view(B, -1).  No cast, no pad: x is read
    # from HBM exactly once, in its native dtype.
    x2d = x.reshape(B, -1)
    D = x2d.shape[1]
    assert D == D_w, f"feature dim {D} does not match prepared weight {D_w}"

    x_itemsize = jnp.dtype(x2d.dtype).itemsize
    out_itemsize = jnp.dtype(out_dtype).itemsize
    w_itemsize = jnp.dtype(w_t.dtype).itemsize

    tm_eff = _choose_tm(B, D, Lp, tm, x_itemsize, out_itemsize)
    grid = (pl.cdiv(B, tm_eff),)  # ragged last block handled by Pallas masking

    # Explicit scoped-VMEM limit: actual usage + headroom, capped at 32 MiB
    # (safe on v5e/v6e/v7x).
    vmem_needed = (
        2 * tm_eff * D * x_itemsize
        + 2 * tm_eff * Lp * out_itemsize
        + 2 * D * Lp * w_itemsize
        + 2 * Lp * 4
        + (2 << 20)
    )
    vmem_limit = int(min(max(vmem_needed, 8 << 20), 32 << 20))

    out = pl.pallas_call(
        _linear_kernel,
        out_shape=jax.ShapeDtypeStruct((B, Lp), out_dtype),
        grid=grid,
        in_specs=[
            pl.BlockSpec((tm_eff, D), lambda i: (i, 0)),  # x: streamed tiles
            pl.BlockSpec((D, Lp), lambda i: (0, 0)),      # W^T: resident
            pl.BlockSpec((1, Lp), lambda i: (0, 0)),      # bias: resident
        ],
        out_specs=pl.BlockSpec((tm_eff, Lp), lambda i: (i, 0)),
        compiler_params=pltpu.CompilerParams(
            dimension_semantics=("parallel",),  # lets v7x shard grid over 2 TCs
            vmem_limit_bytes=vmem_limit,
        ),
        cost_estimate=pl.CostEstimate(
            flops=2 * B * D * Lp,
            bytes_accessed=(B * D * x_itemsize
                            + D * Lp * w_itemsize
                            + B * Lp * out_itemsize),
            transcendentals=0,
        ),
    )(x2d, w_t, b_pad)

    # Strip only the lane padding on the label dim (batch dim is exact).
    return out[:, :num_labels]


if __name__ == "__main__":
    # Small, module-consistent shapes: B=2, C=4, H=W=8 -> D = 256, labels = 9
    B, C, H, W = 2, 4, 8, 8
    D = C * H * W
    NUM_LABELS = 9

    key = jax.random.PRNGKey(0)
    kx, kw = jax.random.split(key)

    x = jax.random.normal(kx, (B, C, H, W), dtype=jnp.float32)
    # Deterministic init matching the module: weight ~ N(0, 0.01), bias = 0.
    weight = 0.01 * jax.random.normal(kw, (NUM_LABELS, D), dtype=jnp.float32)
    bias = jnp.zeros((NUM_LABELS,), dtype=jnp.float32)

    # One-time parameter prep (pre-transpose + lane-dense label padding).
    # For throughput at real batch sizes on v6e/v7x pass compute_dtype=jnp.bfloat16
    # (x is cast in-kernel, accumulation stays f32); f32 here keeps the strict
    # 1e-5 correctness check meaningful.
    w_t, b_pad = prepare_params(weight, bias, compute_dtype=jnp.float32)

    out = linear_classifier_forward(x, w_t, b_pad, num_labels=NUM_LABELS)
    out = jax.block_until_ready(out)

    # Reference check (plain JAX, un-padded math).
    ref = x.reshape(B, -1) @ weight.T + bias
    assert out.shape == (B, NUM_LABELS)
    assert jnp.allclose(out, ref, atol=1e-5, rtol=1e-5)

    print("KERNEL_OK")
</pallas_src>

<mosaic_0001>
module attributes {stable_mosaic.version = 11 : i64} {
  func.func @_linear_kernel(%arg0: i32, %arg1: memref<8x256xf32, #tpu.memory_space<vmem>>, %arg2: memref<256x128xf32, #tpu.memory_space<vmem>>, %arg3: memref<1x128xf32, #tpu.memory_space<vmem>>, %arg4: memref<8x128xf32, #tpu.memory_space<vmem>>) attributes {dimension_semantics = [#tpu.dimension_semantics<parallel>], iteration_bounds = array<i64: 1>, scalar_prefetch = 0 : i64, scratch_operands = 0 : i64, tpu.core_type = #tpu.core_type<tc>, window_params = [{transform_indices = @transform_0, window_bounds = array<i64: 8, 256>}, {pipeline_mode = #tpu.pipeline_mode<synchronous>, transform_indices = @transform_1, window_bounds = array<i64: 256, 128>}, {pipeline_mode = #tpu.pipeline_mode<synchronous>, transform_indices = @transform_2, window_bounds = array<i64: 1, 128>}, {transform_indices = @transform_3, window_bounds = array<i64: 8, 128>}]} {
    %c0 = arith.constant 0 : index
    %c0_0 = arith.constant 0 : index
    %0 = vector.load %arg1[%c0, %c0_0] : memref<8x256xf32, #tpu.memory_space<vmem>>, vector<8x256xf32>
    %c0_1 = arith.constant 0 : index
    %c0_2 = arith.constant 0 : index
    %1 = vector.load %arg2[%c0_1, %c0_2] : memref<256x128xf32, #tpu.memory_space<vmem>>, vector<256x128xf32>
    %cst = arith.constant dense<0.000000e+00> : vector<8x128xf32>
    %2 = tpu.matmul %0, %1, %cst {dimension_numbers = #tpu.dot_dimension_numbers<[1], [0], [0], [1], [0, 0, 1, 1], [], []>} : vector<8x256xf32>, vector<256x128xf32>, vector<8x128xf32> -> vector<8x128xf32>
    %c0_3 = arith.constant 0 : index
    %c0_4 = arith.constant 0 : index
    %3 = vector.load %arg3[%c0_3, %c0_4] : memref<1x128xf32, #tpu.memory_space<vmem>>, vector<1x128xf32>
    %4 = vector.broadcast %3 : vector<1x128xf32> to vector<8x128xf32>
    %5 = arith.addf %2, %4 : vector<8x128xf32>
    %c0_5 = arith.constant 0 : index
    %c0_6 = arith.constant 0 : index
    %6 = vector.load %arg4[%c0_5, %c0_6] : memref<8x128xf32, #tpu.memory_space<vmem>>, vector<8x128xf32>
    tpu.vector_store %arg4[%c0_5, %c0_6], %5 {strides = array<i32>} : memref<8x128xf32, #tpu.memory_space<vmem>>, vector<8x128xf32>,
    return
  }
  func.func @transform_0(%arg0: i32) -> (i32, i32) {
    %c0_i32 = arith.constant 0 : i32
    %c0_i32_0 = arith.constant 0 : i32
    return %arg0, %c0_i32 : i32, i32
  }
  func.func @transform_1(%arg0: i32) -> (i32, i32) {
    %c0_i32 = arith.constant 0 : i32
    %c0_i32_0 = arith.constant 0 : i32
    %c0_i32_1 = arith.constant 0 : i32
    return %c0_i32, %c0_i32_0 : i32, i32
  }
  func.func @transform_2(%arg0: i32) -> (i32, i32) {
    %c0_i32 = arith.constant 0 : i32
    %c0_i32_0 = arith.constant 0 : i32
    %c0_i32_1 = arith.constant 0 : i32
    return %c0_i32, %c0_i32_0 : i32, i32
  }
  func.func @transform_3(%arg0: i32) -> (i32, i32) {
    %c0_i32 = arith.constant 0 : i32
    %c0_i32_0 = arith.constant 0 : i32
    return %arg0, %c0_i32 : i32, i32
  }
}

</mosaic_0001>

<bundles_post_ra>
// kernel: linear_classifier_forward.1
= control target key start
LH: loop header
LB: loop body
LE: loop exit
PB: predicated region body
PF: predicated region fallthrough
CT: control target
= control target key end

     0   :  { %8 = vsyncpa [#allocation3], 0  ;;  %s370_s0 = inlined_call_operand.vmem [shape: f32[2,256], index: 0, kind: input, shape index: {}]   ;;  %s371_s1 = inlined_call_operand.hbm [shape: f32[256,128], index: 1, kind: input, shape index: {}]   ;;  %s372_s2 = inlined_call_operand.vmem [shape: f32[1,128], index: 2, kind: input, shape index: {}]   ;;  %s373_s3 = inlined_call_operand.hbm [shape: f32[2,128], index: 3, kind: output, shape index: {}]  }
   0x1   :  { %9 = vsyncpa [#allocation4], 0  ;;  %s311_s12 = smov [#allocation2]   ;;  %s263_s16 = scalar_lea.hbm %s371_s1, 4096 }
   0x2   :  { %s17_s13 = sshll.u32 %s311_s12, 4  ;;  %p264_p0 = scmp.ne.s32.totalorder %s371_s1, %s263_s16  ;;  %s18_s13 = int_to_ptr.vmem [resolvable:$true] %s17_s13 }
   0x3   :  { %p267_p1 = scmp.lt.u32.totalorder %s263_s16, %s371_s1 }
   0x5   :  { %p269_p2 = pnand %p267_p1, %p264_p0 }
   0x7   :  { %272 = shalt.err (!%p269_p2)
}
   0x8   :  { %s273_s21 = scalar_lea.vmem %s18_s13, 4096  ;;  %p278_p4 = scmp.lt.s32.totalorder %s18_s13, %s18_s13 }
   0x9   :  { %p274_p3 = scmp.ne.s32.totalorder %s18_s13, %s273_s21  ;;  %p279_p5 = scmp.lt.s32.totalorder %s273_s21, %s273_s21 }
   0xb   :  { %p280_p6 = por %p279_p5, %p278_p4 }
   0xd   :  { %p281_p7 = pnand %p280_p6, %p274_p3 }
   0xf   :  { %284 = shalt.err (!%p281_p7)
}
  0x10   :  { %s312_s22 = smov 128   ;;  %s313_s23 = smov 8  }
  0x11   :  { %23 = dma.hbm_to_vmem [thread:$0]  %s371_s1, 4096, %s18_s13, [#allocation3], %s312_s22, %s312_s22, %s313_s23  }
  0x12   :  { %307 = dma.done.wait [#allocation3], 4096  }
  0x13   :  { %308 = vsyncadd [#allocation3], 4294963200  ;;  %v49_v0 = vld [vmem:[#allocation2 + $0x80] sm:$0xff]  ;;  %v50_v1 = vld [vmem:[#allocation2 + $0x88] sm:$0xff] }
  0x14   :  { %v33_v2 = vld [vmem:[#allocation2] sm:$0xff]  ;;  %v220_v3 = vpack.c.bf16 %v50_v1, %v49_v0  ;;  %v34_v4 = vld [vmem:[#allocation2 + $0x8] sm:$0xff]  ;;  %v51_v5 = vld [vmem:[#allocation2 + $0x90] sm:$0xff] }
  0x15   :  { %v52_v6 = vld [vmem:[#allocation2 + $0x98] sm:$0xff]  ;;  %v222_v7 = vpack.c.bf16 %v34_v4, %v33_v2  ;;  %v35_v9 = vld [vmem:[#allocation2 + $0x10] sm:$0xff]  ;;  %v53_v11 = vld [vmem:[#allocation2 + $0xa0] sm:$0xff] }
  0x16   :  { %v224_v8 = vpack.c.bf16 %v52_v6, %v51_v5  ;;  %v36_v10 = vld [vmem:[#allocation2 + $0x18] sm:$0xff]  ;;  %221 = vmatprep.subr.bf16.mxu0 %v220_v3  ;;  %v54_v12 = vld [vmem:[#allocation2 + $0xa8] sm:$0xff]  ;;  %v37_v15 = vld [vmem:[#allocation2 + $0x20] sm:$0xff] }
  0x17   :  { %223 = vmatpush3.bf16.msra.mxu0 %v222_v7  ;;  %v226_v13 = vpack.c.bf16 %v36_v10, %v35_v9  ;;  %v228_v14 = vpack.c.bf16 %v54_v12, %v53_v11  ;;  %v38_v16 = vld [vmem:[#allocation2 + $0x28] sm:$0xff]  ;;  %v55_v17 = vld [vmem:[#allocation2 + $0xb0] sm:$0xff]  ;;  %v56_v18 = vld [vmem:[#allocation2 + $0xb8] sm:$0xff] }
  0x18   :  { %225 = vmatprep.subr.bf16.mxu0 %v224_v8  ;;  %v230_v19 = vpack.c.bf16 %v38_v16, %v37_v15  ;;  %v232_v20 = vpack.c.bf16 %v56_v18, %v55_v17  ;;  %v39_v21 = vld [vmem:[#allocation2 + $0x30] sm:$0xff]  ;;  %v40_v22 = vld [vmem:[#allocation2 + $0x38] sm:$0xff]  ;;  %v57_v23 = vld [vmem:[#allocation2 + $0xc0] sm:$0xff] }
  0x19   :  { %v58_v24 = vld [vmem:[#allocation2 + $0xc8] sm:$0xff]  ;;  %v234_v25 = vpack.c.bf16 %v40_v22, %v39_v21  ;;  %v261_v26 = vld.sshfl [vmem:[%s370_s0] sm:$0xff pattern:$0x76325410]  ;;  %v59_v31 = vld [vmem:[#allocation2 + $0xd0] sm:$0xff] }
  0x1a   :  { %v262_v27 = vld.sshfl [vmem:[%s370_s0 + $0x8] sm:$0xff pattern:$0x76325410]  ;;  %v236_v28 = vpack.c.bf16 %v58_v24, %v57_v23  ;;  %v41_v29 = vld [vmem:[#allocation2 + $0x40] sm:$0xff]  ;;  %v60_v32 = vld [vmem:[#allocation2 + $0xd8] sm:$0xff] }
  0x1b   :  { %227 = vmatpush3.bf16.msra.mxu0 %v226_v13  ;;  %v42_v30 = vld [vmem:[#allocation2 + $0x48] sm:$0xff]  ;;  %v93_v34 = vcombine.high %v261_v26, %v262_v27  ;;  %v240_v35 = vpack.c.bf16 %v60_v32, %v59_v31  ;;  %v43_v36 = vld [vmem:[#allocation2 + $0x50] sm:$0xff]  ;;  %v44_v37 = vld [vmem:[#allocation2 + $0x58] sm:$0xff]  ;;  %v92_v51 = vcombine.low %v261_v26, %v262_v27 }
  0x1c   :  { %229 = vmatprep.subr.bf16.mxu0 %v228_v14  ;;  %v238_v33 = vpack.c.bf16 %v42_v30, %v41_v29  ;;  %v61_v38 = vld [vmem:[#allocation2 + $0xe0] sm:$0xff]  ;;  %v62_v39 = vld [vmem:[#allocation2 + $0xe8] sm:$0xff]  ;;  %v242_v40 = vpack.c.bf16 %v44_v37, %v43_v36  ;;  %v63_v44 = vld [vmem:[#allocation2 + $0xf0] sm:$0xff] }
  0x1d   :  { %160 = vmatprep.mubr.f32.mxu0 %v93_v34  ;;  %v244_v41 = vpack.c.bf16 %v62_v39, %v61_v38  ;;  %v45_v42 = vld [vmem:[#allocation2 + $0x60] sm:$0xff]  ;;  %v46_v43 = vld [vmem:[#allocation2 + $0x68] sm:$0xff]  ;;  %v64_v45 = vld [vmem:[#allocation2 + $0xf8] sm:$0xff] }
  0x1e   :  { %v246_v46 = vpack.c.bf16 %v46_v43, %v45_v42  ;;  %v248_v47 = vpack.c.bf16 %v64_v45, %v63_v44  ;;  %v47_v48 = vld [vmem:[#allocation2 + $0x70] sm:$0xff]  ;;  %v48_v49 = vld [vmem:[#allocation2 + $0x78] sm:$0xff]  ;;  %v184_v53 = vld [vmem:[%s372_s2] ss:$0 sm:$0xff] }
  0x1f   :  { %231 = vmatpush3.bf16.msra.mxu0 %v230_v19  ;;  %v250_v50 = vpack.c.bf16 %v48_v49, %v47_v48 }
  0x20   :  { %233 = vmatprep.subr.bf16.mxu0 %v232_v20 }
  0x23   :  { %235 = vmatpush3.bf16.msra.mxu0 %v234_v25 }
  0x24   :  { %237 = vmatprep.subr.bf16.mxu0 %v236_v28 }
  0x27   :  { %239 = vmatpush3.bf16.msra.mxu0 %v238_v33 }
  0x28   :  { %241 = vmatprep.subr.bf16.mxu0 %v240_v35 }
  0x2b   :  { %243 = vmatpush3.bf16.msra.mxu0 %v242_v40 }
  0x2c   :  { %245 = vmatprep.subr.bf16.mxu0 %v244_v41 }
  0x2f   :  { %247 = vmatpush3.bf16.msra.mxu0 %v246_v46 }
  0x30   :  { %249 = vmatprep.subr.bf16.mxu0 %v248_v47 }
  0x33   :  { %251 = vmatpush3.bf16.msra.mxu0 %v250_v50 }
  0x36   :  { %161 = vmatmul.mubr.f32.vlgmr.msra.gmra.mrb[0].mxu0 %v92_v51 }
 0x109   :  { %v217_v52 = vpop.f32.mrb[0].mxu0 }
 0x10a   :  { %v218_v54 = vpop.f32.mrb[1].mxu0 }
 0x10b   :  { %v219_v55 = vadd.f32 %v218_v54, %v217_v52 }
 0x10d   :  { %v163_v56 = vadd.f32 %v219_v55, %v184_v53 }
 0x10f   :  { %166 = vst [vmem:[#allocation5] sm:$0xff] %v163_v56 }
 0x110   :  { %171 = vsyncadd [#allocation4], 96  ;;  %s314_s30 = smov [#allocation5]  }
 0x111   :  { %s172_s4 = sshll.u32 %s314_s30, 4  ;;  %s173_s4 = int_to_ptr.vmem [resolvable:$true] %s172_s4 }
 0x112   :  { %s285_s5 = scalar_lea.vmem %s173_s4, 32  ;;  %s289_s6 = scalar_lea.vmem %s173_s4, 128 }
 0x113   :  { %p286_p8 = scmp.ne.s32.totalorder %s173_s4, %s285_s5  ;;  %p290_p9 = scmp.lt.s32.totalorder %s173_s4, %s173_s4 }
 0x114   :  { %p291_p10 = scmp.lt.s32.totalorder %s289_s6, %s285_s5 }
 0x116   :  { %p292_p11 = por %p291_p10, %p290_p9 }
 0x118   :  { %p293_p12 = pnand %p292_p11, %p286_p8 }
 0x11a   :  { %296 = shalt.err (!%p293_p12)
}
 0x11b   :  { %s297_s2 = scalar_lea.hbm %s373_s3, 32 }
 0x11c   :  { %p298_p13 = scmp.ne.s32.totalorder %s373_s3, %s297_s2  ;;  %p301_p0 = scmp.lt.u32.totalorder %s297_s2, %s373_s3 }
 0x11e   :  { %p303_p1 = pnand %p301_p0, %p298_p13 }
 0x120   :  { %306 = shalt.err (!%p303_p1)
}
 0x121   :  { %s315_s13 = smov 32   ;;  %s316_s14 = smov 2  }
 0x122   :  { %178 = dma.vmem_to_hbm [thread:$0]  %s173_s4, 32, %s373_s3, [#allocation4], %s315_s13, %s315_s13, %s316_s14  }
 0x123   :  { %309 = dma.done.wait [#allocation4], 128  }
 0x124   :  { %310 = vsyncadd [#allocation4], 4294967168 }
 0x125   :  { %182 = vsyncpa [#allocation3], 1 }
 0x126   :  { %183 = vsyncpa [#allocation4], 1 }

</bundles_post_ra>
